<compile_context>
chip_gen: v5e
topology: v5e:2x2
jax: 0.10.0
libtpu: 0.0.40
codegen_flags: <defaults>
</compile_context>

<pallas_src>
import jax
import jax.numpy as jnp
from jax.experimental import pallas as pl
from jax.experimental.pallas import tpu as pltpu


def _cosine_embed_kernel(coords_ref, w_ref, out_ref):
    """coords_ref: (1, T) f32, w_ref: (D, 1) f32, out_ref: (2*D, T)."""
    D = w_ref.shape[0]
    # (1, T) sublane-broadcast x (D, 1) lane-broadcast -> (D, T).
    # Pure VPU/EUP work; a K=1 MXU contraction would waste the systolic array.
    prod = coords_ref[...] * w_ref[...]
    s = jnp.sin(prod).astype(out_ref.dtype)
    c = jnp.cos(prod).astype(out_ref.dtype)
    if D % 8 == 0:
        # Two aligned static sublane-slice stores: no concat, no relayout.
        out_ref[:D, :] = s
        out_ref[D:, :] = c
    else:
        # Second half would start mid-(8,128) tile -> store once, concatenated.
        out_ref[...] = jnp.concatenate([s, c], axis=0)


def _vmem_budget_bytes():
    """~75% of physical per-TensorCore VMEM (generation-aware headroom)."""
    try:
        cap = int(pltpu.get_tpu_info().vmem_capacity_bytes)
    except Exception:  # pragma: no cover - conservative fallback (v7x size)
        cap = 64 << 20
    return (cap * 3) // 4


def _choose_tile_hw(hw, d, max_tile_hw, vmem_cap):
    """Largest lane tile (multiple of 128) whose double-buffered coords + out
    blocks fit the VMEM budget; prefers tiles that divide hw exactly."""
    bytes_per_lane = 2 * 4 * (1 + 2 * d)          # 2 buffers x (coords + out) x f32
    fit = max((vmem_cap - (2 << 20)) // bytes_per_lane, 128)
    limit = min(max_tile_hw, fit)
    if hw <= limit:
        return hw                                  # single full-extent lane block
    t = max(limit - (limit % 128), 128)
    cand = t
    while cand >= 128:                             # prefer an exact divisor of hw
        if hw % cand == 0:
            return cand
        cand -= 128
    return t                                       # cdiv grid + masked last block


def _sin_cos_embed_nchw(coords_nhw, w, *, max_tile_hw=32768, out_dtype=jnp.float32):
    """coords_nhw: (N, 1, HW) f32, w: (D,) f32 -> (N, 2*D, HW).

    out[n, d, p]     = sin(coords[n, 0, p] * w[d])   for d < D
    out[n, D + d, p] = cos(coords[n, 0, p] * w[d])   for d < D
    i.e. exactly the PyTorch (N, embed_dim, H, W) output layout (HW flattened).
    """
    N, _, HW = coords_nhw.shape
    D = w.shape[0]
    vmem_cap = _vmem_budget_bytes()
    tile_hw = _choose_tile_hw(HW, D, max_tile_hw, vmem_cap)
    grid_hw = pl.cdiv(HW, tile_hw)

    w_col = w.reshape(D, 1).astype(jnp.float32)

    # Tight budget: double-buffered coords + out blocks, tiny w block, margin.
    need = 2 * 4 * tile_hw * (1 + 2 * D) + 4 * D + (2 << 20)
    vmem_limit = int(min(max(need, 16 << 20), vmem_cap))

    return pl.pallas_call(
        _cosine_embed_kernel,
        out_shape=jax.ShapeDtypeStruct((N, 2 * D, HW), out_dtype),
        grid_spec=pltpu.PrefetchScalarGridSpec(
            num_scalar_prefetch=0,
            grid=(N, grid_hw),
            in_specs=[
                # coords: lane-dense (1, tile_hw) block, batch dim squeezed.
                pl.BlockSpec((None, 1, tile_hw), lambda n, t: (n, 0, t)),
                # frequencies: tiny (D, 1) column, constant block index.
                pl.BlockSpec((D, 1), lambda n, t: (0, 0)),
            ],
            # Output written directly in (N, embed_dim, HW) layout: lane-dense.
            out_specs=pl.BlockSpec((None, 2 * D, tile_hw), lambda n, t: (n, 0, t)),
        ),
        compiler_params=pltpu.CompilerParams(
            dimension_semantics=("parallel", "parallel"),
            vmem_limit_bytes=vmem_limit,
        ),
    )(coords_nhw, w_col)


class CosineEmbedding:
    """JAX/Pallas port of the PyTorch CosineEmbedding module (C == 1 path)."""

    def __init__(self, input_dim, embed_dim):
        assert input_dim in [1, 2, 4]
        self.input_dim = input_dim
        self.embed_dim = embed_dim
        self.pe_sigma = jnp.float32(10000.0)

    def convert_posenc(self, coords, *, max_tile_hw=32768):
        N, C, H, W = coords.shape
        if C != self.input_dim:
            raise ValueError("Input channel must be %d, but got %d"
                             % (self.input_dim, C))
        if C != 1:
            # TODO(synk): the reference torch .view(N, C, H, W, embed_dim) is
            # only element-count-consistent for C == 1.
            raise NotImplementedError(
                "Reference semantics only consistent for input_dim == 1")
        if self.embed_dim % (2 * C) != 0:
            raise ValueError("embed_dim must be divisible by 2 * input_dim")

        D = self.embed_dim // (2 * C)
        # w = exp(linspace(0, log(sigma), D))  (endpoint inclusive, as in torch)
        w = jnp.exp(jnp.linspace(0.0, jnp.log(self.pe_sigma), D)).astype(jnp.float32)

        coords_nhw = coords.astype(jnp.float32).reshape(N, 1, H * W)

        # Fused hot path: outer product + sin/cos written directly in the final
        # (N, embed_dim, HW) layout -> only a free reshape left (no transpose).
        emb = _sin_cos_embed_nchw(coords_nhw, w, max_tile_hw=max_tile_hw)
        return emb.reshape(N, C * self.embed_dim, H, W)

    def __call__(self, coords, **kwargs):
        return self.convert_posenc(coords, **kwargs)


def _reference_jax(coords, embed_dim, pe_sigma=10000.0):
    """Pure-JAX reference mirroring the torch code (C == 1 path)."""
    N, C, H, W = coords.shape
    D = embed_dim // (2 * C)
    w = jnp.exp(jnp.linspace(0.0, jnp.log(jnp.float32(pe_sigma)), D))
    ce = jnp.einsum("nhw,d->nhwd", coords.reshape(N * C, H, W), w)
    ce = jnp.concatenate([jnp.sin(ce), jnp.cos(ce)], axis=-1)
    ce = ce.reshape(N, C, H, W, embed_dim)
    ce = jnp.transpose(ce, (0, 1, 4, 2, 3))
    return ce.reshape(N, C * embed_dim, H, W)


if __name__ == "__main__":
    key = jax.random.PRNGKey(0)

    # Primary test (C must be 1 for the reference's .view to be consistent).
    N, C, H, W = 2, 1, 16, 16
    embed_dim = 32
    coords = jax.random.uniform(key, (N, C, H, W), dtype=jnp.float32,
                                minval=-1.0, maxval=1.0)
    module = CosineEmbedding(input_dim=C, embed_dim=embed_dim)
    out = jax.block_until_ready(module(coords))
    ref = _reference_jax(coords, embed_dim)
    assert out.shape == (N, C * embed_dim, H, W), out.shape
    assert jnp.allclose(out, ref, atol=1e-5, rtol=1e-5), "mismatch (single tile)"

    # Multi-tile grid path (force HW // tile > 1).
    out2 = jax.block_until_ready(module(coords, max_tile_hw=128))
    assert jnp.allclose(out2, ref, atol=1e-5, rtol=1e-5), "mismatch (multi tile)"

    # Non-128-divisible HW with a masked partial last lane block.
    H3, W3 = 18, 20  # HW = 360
    coords3 = jax.random.uniform(jax.random.PRNGKey(1), (N, C, H3, W3),
                                 dtype=jnp.float32, minval=-1.0, maxval=1.0)
    out3 = jax.block_until_ready(module(coords3, max_tile_hw=128))
    ref3 = _reference_jax(coords3, embed_dim)
    assert out3.shape == (N, C * embed_dim, H3, W3), out3.shape
    assert jnp.allclose(out3, ref3, atol=1e-5, rtol=1e-5), "mismatch (masked tail)"

    print("KERNEL_OK")
</pallas_src>

<mosaic_0001>
module attributes {stable_mosaic.version = 11 : i64} {
  func.func @_cosine_embed_kernel(%arg0: i32, %arg1: i32, %arg2: memref<1x1x256xf32, #tpu.memory_space<vmem>>, %arg3: memref<16x1xf32, #tpu.memory_space<vmem>>, %arg4: memref<1x32x256xf32, #tpu.memory_space<vmem>>) attributes {dimension_semantics = [#tpu.dimension_semantics<parallel>, #tpu.dimension_semantics<parallel>], iteration_bounds = array<i64: 2, 1>, scalar_prefetch = 0 : i64, scratch_operands = 0 : i64, tpu.core_type = #tpu.core_type<tc>, window_params = [{transform_indices = @transform_0, window_bounds = array<i64: 1, 1, 256>}, {pipeline_mode = #tpu.pipeline_mode<synchronous>, transform_indices = @transform_1, window_bounds = array<i64: 16, 1>}, {transform_indices = @transform_2, window_bounds = array<i64: 1, 32, 256>}]} {
    %c0 = arith.constant 0 : index
    %c0_0 = arith.constant 0 : index
    %c0_1 = arith.constant 0 : index
    %0 = vector.load %arg2[%c0, %c0_0, %c0_1] : memref<1x1x256xf32, #tpu.memory_space<vmem>>, vector<1x1x256xf32>
    %1 = vector.shape_cast %0 : vector<1x1x256xf32> to vector<1x256xf32>
    %c0_2 = arith.constant 0 : index
    %c0_3 = arith.constant 0 : index
    %2 = vector.load %arg3[%c0_2, %c0_3] : memref<16x1xf32, #tpu.memory_space<vmem>>, vector<16x1xf32>
    %3 = vector.broadcast %1 : vector<1x256xf32> to vector<16x256xf32>
    %4 = vector.broadcast %2 : vector<16x1xf32> to vector<16x256xf32>
    %5 = arith.mulf %3, %4 : vector<16x256xf32>
    %6 = math.sin %5 : vector<16x256xf32>
    %7 = math.cos %5 : vector<16x256xf32>
    %c0_4 = arith.constant 0 : index
    %c0_5 = arith.constant 0 : index
    %c0_6 = arith.constant 0 : index
    %8 = vector.load %arg4[%c0_4, %c0_5, %c0_6] : memref<1x32x256xf32, #tpu.memory_space<vmem>>, vector<1x16x256xf32>
    %9 = vector.shape_cast %8 : vector<1x16x256xf32> to vector<16x256xf32>
    %10 = vector.shape_cast %6 : vector<16x256xf32> to vector<1x16x256xf32>
    tpu.vector_store %arg4[%c0_4, %c0_5, %c0_6], %10 {strides = array<i32>} : memref<1x32x256xf32, #tpu.memory_space<vmem>>, vector<1x16x256xf32>,
    %c0_7 = arith.constant 0 : index
    %c16 = arith.constant 16 : index
    %c0_8 = arith.constant 0 : index
    %11 = vector.load %arg4[%c0_7, %c16, %c0_8] : memref<1x32x256xf32, #tpu.memory_space<vmem>>, vector<1x16x256xf32>
    %12 = vector.shape_cast %11 : vector<1x16x256xf32> to vector<16x256xf32>
    %13 = vector.shape_cast %7 : vector<16x256xf32> to vector<1x16x256xf32>
    tpu.vector_store %arg4[%c0_7, %c16, %c0_8], %13 {strides = array<i32>} : memref<1x32x256xf32, #tpu.memory_space<vmem>>, vector<1x16x256xf32>,
    return
  }
  func.func @transform_0(%arg0: i32, %arg1: i32) -> (i32, i32, i32) {
    %c0_i32 = arith.constant 0 : i32
    %c0_i32_0 = arith.constant 0 : i32
    return %arg0, %c0_i32, %arg1 : i32, i32, i32
  }
  func.func @transform_1(%arg0: i32, %arg1: i32) -> (i32, i32) {
    %c0_i32 = arith.constant 0 : i32
    %c0_i32_0 = arith.constant 0 : i32
    %c0_i32_1 = arith.constant 0 : i32
    return %c0_i32, %c0_i32_0 : i32, i32
  }
  func.func @transform_2(%arg0: i32, %arg1: i32) -> (i32, i32, i32) {
    %c0_i32 = arith.constant 0 : i32
    %c0_i32_0 = arith.constant 0 : i32
    return %arg0, %c0_i32, %arg1 : i32, i32, i32
  }
}

</mosaic_0001>

<bundles_post_ra>
// kernel: tpu_custom_call.1
= control target key start
LH: loop header
LB: loop body
LE: loop exit
PB: predicated region body
PF: predicated region fallthrough
CT: control target
= control target key end

     0   :  { %7 = vsyncpa [#allocation3], 0  ;;  %s2354_s0 = inlined_call_operand.vmem [shape: f32[2,1,256], index: 0, kind: input, shape index: {}]   ;;  %s2355_s1 = inlined_call_operand.vmem [shape: f32[16,1], index: 1, kind: input, shape index: {}]   ;;  %s2356_s2 = inlined_call_operand.hbm [shape: f32[2,32,256], index: 2, kind: output, shape index: {}]  }
   0x1   :  { %9 = vsyncpa [#allocation3 + $0x1], 0  ;;  %s1736_s9 = smov 0   ;;  %s1738_s10 = smov 0  }
   0x2   :  { %s1740_s11 = smov 0   ;;  %s1742_s12 = smov 0  }
   0x3   :  { %s1744_s13 = smov 0   ;;  %s1746_s14 = smov 0  }
   0x4 LB: > { %s1530_s15 = sadd.s32 4294967295, %s1710_s14   ;;  %s1531_s16 = sadd.s32 4294967294, %s1710_s14   ;;  %s1710_s14 = sphi %s1746_s14, %s15_s14   ;;  %s1706_s13 = sphi %s1744_s13, %s2369_s13   ;;  %s1702_s12 = sphi %s1742_s12, %s2368_s12   ;;  %s1698_s11 = sphi %s1740_s11, %s2367_s11   ;;  %s1694_s10 = sphi %s1738_s10, %s2366_s10   ;;  %s1690_s9 = sphi %s1736_s9, %s2365_s9  }
   0x5   : > { %s27_s17 = sadd.s32 1, %s1706_s13  ;;  %s85_s18 = sadd.s32 1, %s1698_s11 }
   0x6   : > { %p29_p0 = scmp.ge.s32.totalorder %s27_s17, 2  ;;  %p95_p1 = scmp.ne.s32.totalorder %s1698_s11, %s1694_s10 }
   0x7   : > { %p96_p2 = scmp.eq.s32.totalorder %s1530_s15, 1  ;;  %p101_p3 = scmp.ne.s32.totalorder %s1694_s10, %s1690_s9 }
   0x8   : > { %s2371_s17 = smov (%p29_p0, %s27_s17), 0  ;;  %p102_p5 = scmp.eq.s32.totalorder %s1531_s16, 1 }
   0x9   : > { %p1776_p4 = por %p96_p2, %p95_p1  ;;  %s80_s20 = ssub.s32 %s1706_s13, %s2371_s17 }
   0xa   : > { %p1534_p6 = scmp.ge.s32.totalorder %s1710_s14, 1  ;;  %p83_p7 = scmp.eq.s32.totalorder %s80_s20, 0 }
   0xb   : > { %p1783_p8 = por %p102_p5, %p101_p3  ;;  %p135_p9 = scmp.lt.s32.totalorder %s1710_s14, 3 }
   0xc   : > { %s1789_s22 = scalar_select %p83_p7, %s1698_s11, %s85_s18  }
   0xd   : > { %p136_p10 = pnand %p1534_p6, %p135_p9 }
   0xe   : > { %p161_p11 = scmp.lt.s32.totalorder (!%p136_p10), %s1702_s12, 1  ;;  %s157_s4 = sand.u32 (!%p136_p10), 1, %s1694_s10  }
   0xf   : > { %139 = sbr.rel (%p136_p10) target bundleno = 336 (0x150), region = 28  ;;  %s1535_s5 = sshll.u32 (!%p136_p10), %s157_s4, 6 }
  0x10   : > { %s2147_s6 = scalar_lea.vmem (!%p136_p10), [#allocation2], %s1535_s5  ;;  %s1566_s7 = sshll.u32 (!%p136_p10), %s1702_s12, 6 }
  0x11   : > { %s1450_s16 = scalar_lea.hbm (!%p136_p10), %s2356_s2, %s1566_s7  ;;  %s1451_s18 = sshll.u32 (!%p136_p10), %s2147_s6, 4  ;;  %s1452_s18 = int_to_ptr.vmem [resolvable:$true] %s1451_s18 }
  0x12   : > { %s1453_s20 = sshll.u32 (!%p136_p10), %s1450_s16, 4  ;;  %s1454_s20 = int_to_ptr.hbm [resolvable:$true] %s1453_s20 }
  0x13   : > { %s1646_s23 = sshra.s32 (!%p136_p10), %s1454_s20, 4  ;;  %s1647_s23 = int_to_ptr.hbm [resolvable:$true] %s1646_s23 }
  0x14   : > { %v171_v0 = vld [vmem:[%s2355_s1] sm:$0xff]  ;;  %v1712_v1 = vmov 0   ;;  %v172_v2 = vld [vmem:[%s2355_s1 + $0x8] sm:$0xff]  ;;  %s162_s27 = scalar_select %p161_p11, %s1702_s12, 1  ;;  %v1713_v35 = vmov 683565275  }
  0x15   : > { %1631 = vset.pattern.permute.xlu0 %v1712_v1  ;;  %v1714_v37 = vmov 2475754826   ;;  %v1715_v41 = vmov 2131351028   ;;  %v1716_v44 = vmov 2102212464   ;;  %p1653_p1 = scmp.lt.s32.totalorder %s1647_s23, %s2356_s2 }
  0x16   : > { %180 = vperm.xlu0 %1631, %v171_v0   ;;  %s1536_s28 = sshll.u32 %s162_s27, 1  ;;  %v1717_v47 = vmov 920167782   ;;  %v1718_v50 = vmov 1326507024   ;;  %s1437_s12 = scalar_lea.sflag [#allocation3], %s157_s4 }
  0x17   : > { %s167_s3 = scalar_lea.vmem %s2354_s0, %s1536_s28  ;;  %s1648_s24 = scalar_lea.hbm %s1647_s23, 64 }
  0x18   : > { %v1803_v3 = vld [vmem:[%s167_s3] sm:$0x3]  ;;  %p1649_p12 = scmp.ne.s32.totalorder %s1647_s23, %s1648_s24  ;;  %s1652_s27 = scalar_lea.hbm %s2356_s2, 128 }
  0x19   : > { %v174_v4 = vperm.slane %v1803_v3, 0  ;;  %v175_v5 = vperm.slane %v1803_v3, 1  ;;  %p1654_p2 = scmp.lt.s32.totalorder %s1652_s27, %s1648_s24 }
  0x1a   : > { %p1650_p13 = pnand %p1649_p12, %p1776_p4 }
  0x1b   : > { %p1655_p3 = por %p1654_p2, %p1653_p1 }
  0x1c   : > { %p1651_p0 = pneg %p1650_p13 }
  0x1e   : > { %185 = vperm.xlu0 %1631, %v172_v2   ;;  %p1656_p5 = pnand %p1655_p3, %p1651_p0 }
  0x88   : > { %v181_v6 = vpop.permute.xlu0 %180 }
  0x89   : > { %v1807_v7 = vmul.f32 %v181_v6, %v174_v4  ;;  %v1811_v8 = vmul.f32 %v181_v6, %v175_v5 }
  0x8b   : > { %v192_v9 = vand.u32 2147483647, %v1807_v7  ;;  %v195_v10 = vand.u32 2139095040, %v1807_v7  ;;  %v347_v11 = vand.u32 2147483647, %v1811_v8  ;;  %v350_v12 = vand.u32 2139095040, %v1811_v8 }
  0x8d   : > { %v196_v13 = vshrl.u32 %v195_v10, 23  ;;  %v199_v14 = vand.u32 8388607, %v192_v9  ;;  %v351_v15 = vshrl.u32 %v350_v12, 23  ;;  %v354_v16 = vand.u32 8388607, %v347_v11 }
  0x8f   : > { %v1537_v17 = vadd.s32 4294967169, %v196_v13  ;;  %v200_v18 = vor.u32 8388608, %v199_v14  ;;  %v1540_v19 = vadd.s32 4294967169, %v351_v15  ;;  %v355_v20 = vor.u32 8388608, %v354_v16 }
  0x90   : > { %v1821_v23 = vpop.permute.xlu0 %185 }
  0x91   : > { %v202_v21 = vadd.s32 1, %v1537_v17  ;;  %v357_v22 = vadd.s32 1, %v1540_v19  ;;  %v1823_v24 = vshll.u32 %v200_v18, 8  ;;  %v1825_v26 = vshll.u32 %v355_v20, 8 }
  0x92   : > { %v1828_v29 = vmul.f32 %v1821_v23, %v174_v4 }
  0x93   : > { %vm203_vm0 = vcmp.gt.s32.totalorder %v202_v21, 0  ;;  %vm358_vm1 = vcmp.gt.s32.totalorder %v357_v22, 0  ;;  %v1831_v31 = vand.u32 65535, %v1823_v24  ;;  %v1834_v32 = vshrl.u32 %v1823_v24, 16 }
  0x94   : > { %v204_v25 = vsel %vm203_vm0, %v202_v21, 0  ;;  %v359_v28 = vsel %vm358_vm1, %v357_v22, 0  ;;  %v1843_v39 = vand.u32 65535, %v1825_v26  ;;  %vm194_vm1 = vcmp.lt.s32.totalorder %v1807_v7, 0 }
  0x95   : > { %v206_v27 = vand.u32 31, %v204_v25  ;;  %v1836_v33 = vand.u32 31, %v359_v28  ;;  %v1838_v34 = vshrl.u32 %v204_v25, 5  ;;  %v1885_v21 = vshrl.u32 %v359_v28, 5 }
  0x97   : > { %v207_v30 = vsub.s32 32, %v206_v27  ;;  %v209_v36 = vshll.u32 %v1713_v35, %v206_v27  ;;  %v212_v38 = vshll.u32 %v1714_v37, %v206_v27  ;;  %v215_v43 = vshll.u32 %v1715_v41, %v206_v27 }
  0x98   : > { %v218_v46 = vshll.u32 %v1716_v44, %v206_v27  ;;  %v221_v49 = vshll.u32 %v1717_v47, %v206_v27  ;;  %v1854_v55 = vsub.s32 32, %v1836_v33  ;;  %vm224_vm2 = vcmp.lt.s32.totalorder %v1838_v34, 1 }
  0x99   : > { %v210_v40 = vshrl.u32 %v1714_v37, %v207_v30  ;;  %v213_v42 = vshrl.u32 %v1715_v41, %v207_v30  ;;  %v216_v45 = vshrl.u32 %v1716_v44, %v207_v30  ;;  %v219_v48 = vshrl.u32 %v1717_v47, %v207_v30 }
  0x9a   : > { %v222_v51 = vshrl.u32 %v1718_v50, %v207_v30  ;;  %vm225_vm3 = vcmp.lt.s32.totalorder %v1838_v34, 2  ;;  %v208_v58 = vshrl.u32 %v1713_v35, %v207_v30  ;;  %vm227_vm4 = vcmp.lt.s32.totalorder %v1838_v34, 4 }
  0x9b   : > { %v211_v52 = vor.u32 %v210_v40, %v209_v36  ;;  %v214_v53 = vor.u32 %v213_v42, %v212_v38  ;;  %v217_v54 = vor.u32 %v216_v45, %v215_v43  ;;  %v220_v56 = vor.u32 %v219_v48, %v218_v46 }
  0x9c   : > { %v223_v57 = vor.u32 %v222_v51, %v221_v49  ;;  %vm226_vm5 = vcmp.lt.s32.totalorder %v1838_v34, 3  ;;  %v364_v63 = vshll.u32 %v1713_v35, %v1836_v33  ;;  %v365_v6 = vshrl.u32 %v1714_v37, %v1854_v55 }
  0x9d   : > { %v232_v59 = vsel %vm224_vm2, %v211_v52, %v214_v53  ;;  %v236_v60 = vsel %vm224_vm2, %v214_v53, %v217_v54  ;;  %v233_v61 = vsel %vm227_vm4, %v220_v56, 920167782  ;;  %v229_v0 = vsel %vm227_vm4, %v217_v54, 2102212464 }
  0x9e   : > { %v237_v62 = vsel %vm227_vm4, %v223_v57, 1326507024  ;;  %v234_v2 = vsel %vm226_vm5, %v217_v54, %v233_v61  ;;  %v367_v13 = vshll.u32 %v1714_v37, %v1836_v33  ;;  %v368_v14 = vshrl.u32 %v1715_v41, %v1854_v55 }
  0x9f   : > { %v238_v4 = vsel %vm226_vm5, %v220_v56, %v237_v62  ;;  %v235_v10 = vsel %vm225_vm3, %v232_v59, %v234_v2  ;;  %v228_v19 = vsel %vm224_vm2, %v208_v58, %v211_v52  ;;  %v230_v20 = vsel %vm226_vm5, %v214_v53, %v229_v0 }
  0xa0   : > { %v239_v12 = vsel %vm225_vm3, %v236_v60, %v238_v4  ;;  %v265_v17 = vand.u32 65535, %v235_v10  ;;  %v266_v18 = vshrl.u32 %v235_v10, 16  ;;  %v1887_v22 = vor.u32 %v365_v6, %v364_v63 }
  0xa1   : > { %v243_v15 = vand.u32 65535, %v239_v12  ;;  %v244_v16 = vshrl.u32 %v239_v12, 16  ;;  %v1891_v30 = vor.u32 %v368_v14, %v367_v13  ;;  %v371_v36 = vshrl.u32 %v1716_v44, %v1854_v55 }
  0xa2   : > { %v268_v40 = vmul.u32 %v266_v18, %v1831_v31  ;;  %v269_v42 = vmul.u32 %v265_v17, %v1834_v32  ;;  %v370_v28 = vshll.u32 %v1715_v41, %v1836_v33  ;;  %v267_v46 = vmul.u32 %v265_v17, %v1831_v31 }
  0xa3   : > { %v246_v25 = vmul.u32 %v244_v16, %v1831_v31  ;;  %v247_v27 = vmul.u32 %v243_v15, %v1834_v32  ;;  %v245_v38 = vmul.u32 %v243_v15, %v1831_v31  ;;  %v248_v43 = vmul.u32 %v244_v16, %v1834_v32 }
  0xa4   : > { %v270_v48 = vmul.u32 %v266_v18, %v1834_v32  ;;  %v271_v53 = vshll.u32 %v268_v40, 16  ;;  %v273_v56 = vshll.u32 %v269_v42, 16  ;;  %v372_v57 = vor.u32 %v371_v36, %v370_v28 }
  0xa5   : > { %v249_v45 = vshll.u32 %v246_v25, 16  ;;  %v250_v49 = vshrl.u32 %v246_v25, 16  ;;  %v251_v51 = vshll.u32 %v247_v27, 16  ;;  %v252_v52 = vshrl.u32 %v247_v27, 16 }
  0xa6   : > { %vm275_vm7 = vc.u32 %v267_v46, %v271_v53  ;;  %v277_v59 = vadd.s32 %v271_v53, %v267_v46  ;;  %v374_v60 = vshrl.u32 %v1717_v47, %v1854_v55  ;;  %v373_v32 = vshll.u32 %v1716_v44, %v1836_v33 }
  0xa7   : > { %vm253_vm6 = vc.u32 %v245_v38, %v249_v45  ;;  %v255_v54 = vadd.s32 %v249_v45, %v245_v38  ;;  %v276_v31 = vsel %vm275_vm7, 1, %v1712_v1  ;;  %v376_v0 = vshll.u32 %v1717_v47, %v1836_v33 }
  0xa8   : > { %v254_v58 = vsel %vm253_vm6, 1, %v1712_v1  ;;  %v278_v63 = vadd.s32 %v276_v31, %v270_v48  ;;  %vm279_vm9 = vc.u32 %v277_v59, %v273_v56  ;;  %v375_v6 = vor.u32 %v374_v60, %v373_v32 }
  0xa9   : > { %v256_v61 = vadd.s32 %v254_v58, %v248_v43  ;;  %vm257_vm8 = vc.u32 %v255_v54, %v251_v51  ;;  %v280_v4 = vsel %vm279_vm9, 1, %v1712_v1  ;;  %v377_v10 = vshrl.u32 %v1718_v50, %v1854_v55 }
  0xaa   : > { %v258_v62 = vsel %vm257_vm8, 1, %v1712_v1  ;;  %v272_v12 = vshrl.u32 %v268_v40, 16  ;;  %v274_v13 = vshrl.u32 %v269_v42, 16  ;;  %v1915_v14 = vadd.s32 %v277_v59, %v273_v56 }
  0xab   : > { %v260_v2 = vadd.s32 %v258_v62, %v256_v61  ;;  %v282_v15 = vadd.s32 %v280_v4, %v278_v63  ;;  %v378_v17 = vor.u32 %v377_v10, %v376_v0  ;;  %vm379_vm10 = vcmp.lt.s32.totalorder %v1885_v21, 1 }
  0xac   : > { %vm382_vm11 = vcmp.lt.s32.totalorder %v1885_v21, 4  ;;  %vm381_vm12 = vcmp.lt.s32.totalorder %v1885_v21, 3  ;;  %v387_v33 = vsel %vm379_vm10, %v1887_v22, %v1891_v30  ;;  %vm380_vm13 = vcmp.lt.s32.totalorder %v1885_v21, 2 }
  0xad   : > { %v261_v16 = vadd.s32 %v260_v2, %v250_v49  ;;  %v283_v18 = vadd.s32 %v282_v15, %v272_v12  ;;  %v388_v25 = vsel %vm382_vm11, %v375_v6, 920167782  ;;  %v391_v38 = vsel %vm379_vm10, %v1891_v30, %v372_v57 }
  0xae   : > { %v389_v36 = vsel %vm381_vm12, %v372_v57, %v388_v25  ;;  %v231_v40 = vsel %vm225_vm3, %v228_v19, %v230_v20  ;;  %v392_v43 = vsel %vm382_vm11, %v378_v17, 1326507024  ;;  %v397_v46 = vshrl.u32 %v1825_v26, 16 }
  0xaf   : > { %v1926_v27 = vadd.s32 %v261_v16, %v252_v52  ;;  %v284_v42 = vadd.s32 %v283_v18, %v274_v13  ;;  %v390_v28 = vsel %vm380_vm13, %v387_v33, %v389_v36  ;;  %v393_v45 = vsel %vm381_vm12, %v375_v6, %v392_v43 }
  0xb0   : > { %v420_v48 = vand.u32 65535, %v390_v28  ;;  %v394_v34 = vsel %vm380_vm13, %v391_v38, %v393_v45  ;;  %v421_v19 = vshrl.u32 %v390_v28, 16  ;;  %v505_v20 = vand.u32 2139095040, %v1828_v29 }
  0xb1   : > { %vm287_vm14 = vc.u32 %v1926_v27, %v1915_v14  ;;  %v288_v49 = vadd.s32 1, %v284_v42  ;;  %v285_v51 = vmul.u32 %v1823_v24, %v231_v40  ;;  %v398_v52 = vand.u32 65535, %v394_v34 }
  0xb2   : > { %v399_v53 = vshrl.u32 %v394_v34, 16  ;;  %v363_v56 = vshrl.u32 %v1713_v35, %v1854_v55  ;;  %v423_v58 = vmul.u32 %v421_v19, %v1843_v39  ;;  %v424_v59 = vmul.u32 %v420_v48, %v397_v46 }
  0xb3   : > { %v289_v54 = vsel %vm287_vm14, %v288_v49, %v284_v42  ;;  %v384_v61 = vsel %vm382_vm11, %v372_v57, 2102212464  ;;  %v402_v32 = vmul.u32 %v398_v52, %v397_v46  ;;  %v422_v62 = vmul.u32 %v420_v48, %v1843_v39 }
  0xb4   : > { %v290_v60 = vadd.s32 %v289_v54, %v285_v51  ;;  %v401_v31 = vmul.u32 %v399_v53, %v1843_v39  ;;  %v425_v63 = vmul.u32 %v421_v19, %v397_v46  ;;  %v426_v24 = vshll.u32 %v423_v58, 16 }
  0xb5   : > { %v506_v0 = vshrl.u32 %v505_v20, 23  ;;  %v400_v4 = vmul.u32 %v398_v52, %v1843_v39  ;;  %v403_v6 = vmul.u32 %v399_v53, %v397_v46  ;;  %v406_v10 = vshll.u32 %v402_v32, 16 }
  0xb6   : > { %v291_v2 = vadd.s32 536870912, %v290_v60  ;;  %v404_v55 = vshll.u32 %v401_v31, 16  ;;  %v428_v12 = vshll.u32 %v424_v59, 16  ;;  %vm430_vm15 = vc.u32 %v422_v62, %v426_v24 }
  0xb7   : > { %v432_v13 = vadd.s32 %v426_v24, %v422_v62  ;;  %v431_v16 = vsel %vm430_vm15, 1, %v1712_v1  ;;  %v383_v39 = vsel %vm379_vm10, %v363_v56, %v1887_v22  ;;  %v385_v36 = vsel %vm381_vm12, %v1891_v30, %v384_v61 }
  0xb8   : > { %v292_v15 = vshrl.u32 %v291_v2, 30  ;;  %vm408_vm0 = vc.u32 %v400_v4, %v404_v55  ;;  %v410_v57 = vadd.s32 %v404_v55, %v400_v4  ;;  %v433_v18 = vadd.s32 %v431_v16, %v425_v63 }
  0xb9   : > { %v409_v17 = vsel %vm408_vm0, 1, %v1712_v1  ;;  %vm434_vm2 = vc.u32 %v432_v13, %v428_v12  ;;  %v1543_v42 = vadd.s32 4294967169, %v506_v0  ;;  %v405_v43 = vshrl.u32 %v401_v31, 16 }
  0xba   : > { %v293_v33 = vshll.u32 %v292_v15, 30  ;;  %v411_v25 = vadd.s32 %v409_v17, %v403_v6  ;;  %vm412_vm3 = vc.u32 %v410_v57, %v406_v10  ;;  %v435_v40 = vsel %vm434_vm2, 1, %v1712_v1 }
  0xbb   : > { %v413_v38 = vsel %vm412_vm3, 1, %v1712_v1  ;;  %v437_v46 = vadd.s32 %v435_v40, %v433_v18  ;;  %v316_v48 = vsub.s32 4, %v292_v15  ;;  %v427_v49 = vshrl.u32 %v423_v58, 16 }
  0xbc   : > { %v294_v28 = vsub.s32 %v290_v60, %v293_v33  ;;  %v415_v45 = vadd.s32 %v413_v38, %v411_v25  ;;  %v502_v34 = vand.u32 2147483647, %v1828_v29  ;;  %v512_v22 = vadd.s32 1, %v1543_v42 }
  0xbd   : > { %v407_v20 = vshrl.u32 %v402_v32, 16  ;;  %v386_v30 = vsel %vm380_vm13, %v383_v39, %v385_v36  ;;  %v429_v52 = vshrl.u32 %v424_v59, 16  ;;  %v438_v53 = vadd.s32 %v437_v46, %v427_v49 }
  0xbe   : > { %vm295_vm4 = vcmp.lt.s32.totalorder %v294_v28, 0  ;;  %v296_v19 = vsub.s32 0, %v294_v28  ;;  %v416_v51 = vadd.s32 %v415_v45, %v405_v43  ;;  %vm513_vm5 = vcmp.gt.s32.totalorder %v512_v22, 0 }
  0xbf   : > { %v1973_v60 = vadd.s32 %v432_v13, %v428_v12  ;;  %v514_v61 = vsel %vm513_vm5, %v512_v22, 0  ;;  %v317_v31 = vsel %vm194_vm1, %v316_v48, %v292_v15  ;;  %v439_v62 = vadd.s32 %v438_v53, %v429_v52 }
  0xc0   : > { %v297_v54 = vsel %vm295_vm4, %v296_v19, %v294_v28  ;;  %v1971_v56 = vadd.s32 %v416_v51, %v407_v20  ;;  %v516_v63 = vand.u32 31, %v514_v61  ;;  %vm1979_vm6 = vcmp.le.f32.partialorder %v192_v9, 0.7853982 }
  0xc1   : > { %v298_v58 = vclz %v297_v54  ;;  %v443_v32 = vadd.s32 1, %v439_v62  ;;  %v286_v0 = vadd.s32 %v1915_v14, %v1926_v27  ;;  %v1989_v2 = vsel %vm1979_vm6, 0, %v317_v31 }
  0xc2   : > { %vm442_vm7 = vc.u32 %v1971_v56, %v1973_v60  ;;  %v517_v24 = vsub.s32 32, %v516_v63  ;;  %v440_v4 = vmul.u32 %v1825_v26, %v386_v30  ;;  %v509_v9 = vand.u32 8388607, %v502_v34 }
  0xc3   : > { %v1538_v59 = vadd.s32 4294967294, %v298_v58  ;;  %v444_v6 = vsel %vm442_vm7, %v443_v32, %v439_v62  ;;  %v1994_v55 = vshrl.u32 %v514_v61, 5  ;;  %v519_v10 = vshll.u32 %v1713_v35, %v516_v63 }
  0xc4   : > { %v445_v13 = vadd.s32 %v444_v6, %v440_v4  ;;  %v520_v15 = vshrl.u32 %v1714_v37, %v517_v24  ;;  %v523_v14 = vshrl.u32 %v1715_v41, %v517_v24  ;;  %v522_v16 = vshll.u32 %v1714_v37, %v516_v63 }
  0xc5   : > { %vm1539_vm8 = vcmp.lt.s32.totalorder %v1538_v59, 0  ;;  %v526_v26 = vshrl.u32 %v1716_v44, %v517_v24  ;;  %v525_v18 = vshll.u32 %v1715_v41, %v516_v63  ;;  %v528_v33 = vshll.u32 %v1716_v44, %v516_v63 }
  0xc6   : > { %v301_v12 = vsel %vm1539_vm8, 0, %v1538_v59  ;;  %v446_v17 = vadd.s32 536870912, %v445_v13  ;;  %v529_v39 = vshrl.u32 %v1717_v47, %v517_v24  ;;  %v532_v40 = vshrl.u32 %v1718_v50, %v517_v24 }
  0xc7   : > { %v302_v27 = vsub.s32 32, %v301_v12  ;;  %v306_v57 = vsub.s32 4294967266, %v301_v12  ;;  %v303_v25 = vshll.u32 %v294_v28, %v301_v12  ;;  %v521_v43 = vor.u32 %v520_v15, %v519_v10 }
  0xc8   : > { %v2005_v42 = vshrl.u32 %v446_v17, 30  ;;  %v2007_v45 = vor.u32 %v523_v14, %v522_v16  ;;  %v530_v46 = vor.u32 %v529_v39, %v528_v33  ;;  %v527_v22 = vor.u32 %v526_v26, %v525_v18 }
  0xc9   : > { %v304_v36 = vshrl.u32 %v286_v0, %v302_v27  ;;  %v307_v38 = vadd.s32 127, %v306_v57  ;;  %v531_v19 = vshll.u32 %v1717_v47, %v516_v63  ;;  %v336_v20 = vadd.s32 3, %v1989_v2 }
  0xca   : > { %v448_v51 = vshll.u32 %v2005_v42, 30  ;;  %v510_v28 = vor.u32 8388608, %v509_v9  ;;  %vm534_vm9 = vcmp.lt.s32.totalorder %v1994_v55, 1  ;;  %vm537_vm10 = vcmp.lt.s32.totalorder %v1994_v55, 4 }
  0xcb   : > { %v305_v48 = vor.u32 %v304_v36, %v303_v25  ;;  %v308_v49 = vshll.u32 %v307_v38, 23  ;;  %v533_v52 = vor.u32 %v532_v40, %v531_v19  ;;  %vm536_vm11 = vcmp.lt.s32.totalorder %v1994_v55, 3 }
  0xcc   : > { %v2014_v53 = vsub.s32 %v445_v13, %v448_v51  ;;  %v542_v54 = vsel %vm534_vm9, %v521_v43, %v2007_v45  ;;  %v543_v61 = vsel %vm537_vm10, %v530_v46, 920167782  ;;  %vm535_vm13 = vcmp.lt.s32.totalorder %v1994_v55, 2 }
  0xcd   : > { %v309_v30 = vor.u32 4788187, %v308_v49  ;;  %v312_v31 = vcvt.s32.f32 %v305_v48  ;;  %v544_v62 = vsel %vm536_vm11, %v527_v22, %v543_v61  ;;  %v2027_v59 = vshll.u32 %v510_v28, 8 }
  0xce   : > { %vm450_vm12 = vcmp.lt.s32.totalorder %v2014_v53, 0  ;;  %v451_v63 = vsub.s32 0, %v2014_v53  ;;  %v2031_v0 = vsel %vm535_vm13, %v542_v54, %v544_v62  ;;  %v546_v4 = vsel %vm534_vm9, %v2007_v45, %v527_v22 }
  0xcf   : > { %v310_v58 = vand.u32 2147483647, %v309_v30  ;;  %v547_v9 = vsel %vm537_vm10, %v533_v52, 1326507024  ;;  %v2041_v6 = vmul.f32 %v1821_v23, %v175_v5  ;;  %v2043_v10 = vand.u32 3, %v336_v20 }
  0xd0   : > { %v452_v12 = vsel %vm450_vm12, %v451_v63, %v2014_v53  ;;  %v548_v13 = vsel %vm536_vm11, %v530_v46, %v547_v9  ;;  %v518_v27 = vshrl.u32 %v1713_v35, %v517_v24  ;;  %v551_v16 = vand.u32 65535, %v2027_v59 }
  0xd1   : > { %v313_v32 = vmul.f32 %v312_v31, %v310_v58  ;;  %v453_v14 = vclz %v452_v12  ;;  %v549_v57 = vsel %vm535_vm13, %v546_v4, %v548_v13  ;;  %v552_v3 = vshrl.u32 %v2027_v59, 16 }
  0xd2   : > { %v553_v5 = vand.u32 65535, %v549_v57  ;;  %v575_v23 = vand.u32 65535, %v2031_v0  ;;  %v554_v18 = vshrl.u32 %v549_v57, 16  ;;  %v576_v33 = vshrl.u32 %v2031_v0, 16 }
  0xd3   : > { %v314_v15 = vxor.u32 2147483648, %v313_v32  ;;  %v1541_v17 = vadd.s32 4294967294, %v453_v14  ;;  %v441_v39 = vadd.s32 %v1973_v60, %v1971_v56  ;;  %v471_v25 = vsub.s32 4, %v2005_v42 }
  0xd4   : > { %v2065_v36 = vmul.u32 %v553_v5, %v552_v3  ;;  %v2071_v40 = vsel %vm534_vm9, %v518_v27, %v521_v43  ;;  %v556_v46 = vmul.u32 %v554_v18, %v551_v16  ;;  %v539_v21 = vsel %vm537_vm10, %v527_v22, 2102212464 }
  0xd5   : > { %v315_v26 = vsel %vm194_vm1, %v314_v15, %v313_v32  ;;  %vm1542_vm14 = vcmp.lt.s32.totalorder %v1541_v17, 0  ;;  %v555_v49 = vmul.u32 %v553_v5, %v551_v16  ;;  %v577_v19 = vmul.u32 %v575_v23, %v551_v16 }
  0xd6   : > { %v2060_v24 = vsel %vm1979_vm6, %v1807_v7, %v315_v26  ;;  %v456_v48 = vsel %vm1542_vm14, 0, %v1541_v17  ;;  %v2075_v51 = vmul.u32 %v576_v33, %v551_v16  ;;  %v558_v30 = vmul.u32 %v554_v18, %v552_v3 }
  0xd7   : > { %v320_v38 = vmul.f32 %v2060_v24, %v2060_v24  ;;  %v457_v20 = vsub.s32 32, %v456_v48  ;;  %v461_v28 = vsub.s32 4294967266, %v456_v48  ;;  %v559_v52 = vshll.u32 %v556_v46, 16 }
  0xd8   : > { %v561_v54 = vshll.u32 %v2065_v36, 16  ;;  %v458_v58 = vshll.u32 %v2014_v53, %v456_v48  ;;  %v579_v63 = vmul.u32 %v575_v23, %v552_v3  ;;  %vm349_vm0 = vcmp.lt.s32.totalorder %v1811_v8, 0 }
  0xd9   : > { %v321_v56 = vmul.f32 -0.001358992, %v320_v38  ;;  %v328_v60 = vmul.f32 -0.00019511016, %v320_v38  ;;  %v459_v31 = vshrl.u32 %v441_v39, %v457_v20  ;;  %v462_v62 = vadd.s32 127, %v461_v28 }
  0xda   : > { %vm563_vm15 = vc.u32 %v555_v49, %v559_v52  ;;  %v565_v22 = vadd.s32 %v559_v52, %v555_v49  ;;  %v581_v9 = vshll.u32 %v2075_v51, 16  ;;  %v560_v53 = vshrl.u32 %v556_v46, 16 }
  0xdb   : > { %v322_v61 = vadd.f32 0.041655596, %v321_v56  ;;  %v329_v43 = vadd.f32 0.008332121, %v328_v60  ;;  %v564_v4 = vsel %vm563_vm15, 1, %v1712_v1  ;;  %v460_v12 = vor.u32 %v459_v31, %v458_v58 }
  0xdc   : > { %v463_v13 = vshll.u32 %v462_v62, 23  ;;  %v566_v15 = vadd.s32 %v564_v4, %v558_v30  ;;  %vm567_vm1 = vc.u32 %v565_v22, %v561_v54  ;;  %vm339_vm2 = vcmp.eq.s32.totalorder %v2043_v10, 0 }
  0xdd   : > { %v323_v32 = vmul.f32 %v322_v61, %v320_v38  ;;  %v330_v0 = vmul.f32 %v329_v43, %v320_v38  ;;  %v568_v57 = vsel %vm567_vm1, 1, %v1712_v1  ;;  %vm2086_vm3 = vcmp.le.f32.partialorder %v347_v11, 0.7853982 }
  0xde   : > { %v464_v5 = vor.u32 4788187, %v463_v13  ;;  %v570_v23 = vadd.s32 %v568_v57, %v566_v15  ;;  %v580_v26 = vmul.u32 %v576_v33, %v552_v3  ;;  %v583_v17 = vshll.u32 %v579_v63, 16 }
  0xdf   : > { %v324_v14 = vadd.f32 -0.4999988, %v323_v32  ;;  %v331_v27 = vadd.f32 -0.16666654, %v330_v0  ;;  %vm338_vm4 = vcmp.lt.s32.totalorder %v2043_v10, 2  ;;  %vm585_vm5 = vc.u32 %v577_v19, %v581_v9 }
  0xe0   : > { %v587_v46 = vadd.s32 %v581_v9, %v577_v19  ;;  %vm335_vm6 = vweird.f32 %v1807_v7  ;;  %v465_v48 = vand.u32 2147483647, %v464_v5  ;;  %v467_v49 = vcvt.s32.f32 %v460_v12 }
  0xe1   : > { %v325_v18 = vmul.f32 %v324_v14, %v320_v38  ;;  %v332_v39 = vmul.f32 %v331_v27, %v320_v38  ;;  %v571_v56 = vadd.s32 %v570_v23, %v560_v53  ;;  %v586_v11 = vsel %vm585_vm5, 1, %v1712_v1 }
  0xe2   : > { %v588_v3 = vadd.s32 %v586_v11, %v580_v26  ;;  %vm589_vm7 = vc.u32 %v587_v46, %v583_v17  ;;  %v468_v33 = vmul.f32 %v467_v49, %v465_v48  ;;  %v540_v38 = vsel %vm536_vm11, %v2007_v45, %v539_v21 }
  0xe3   : > { %v2094_v60 = vadd.f32 1.0, %v325_v18  ;;  %v333_v20 = vadd.f32 1.0, %v332_v39  ;;  %v562_v19 = vshrl.u32 %v2065_v36, 16  ;;  %v590_v28 = vsel %vm589_vm7, 1, %v1712_v1 }
  0xe4   : > { %v582_v54 = vshrl.u32 %v2075_v51, 16  ;;  %v592_v61 = vadd.s32 %v590_v28, %v588_v3  ;;  %vm342_vm8 = vcmp.eq.s32.totalorder %v2043_v10, 2  ;;  %v469_v43 = vxor.u32 2147483648, %v468_v33 }
  0xe5   : > { %v2102_v30 = vmul.f32 %v333_v20, %v2060_v24  ;;  %v343_v52 = vxor.u32 2147483648, %v2094_v60  ;;  %v472_v45 = vsel %vm349_vm0, %v471_v25, %v2005_v42  ;;  %v2114_v36 = vadd.s32 %v571_v56, %v562_v19 }
  0xe6   : > { %v584_v21 = vshrl.u32 %v579_v63, 16  ;;  %v593_v58 = vadd.s32 %v592_v61, %v582_v54  ;;  %v660_v51 = vand.u32 2139095040, %v2041_v6  ;;  %v470_v62 = vsel %vm349_vm0, %v469_v43, %v468_v33 }
  0xe7   : > { %v340_v24 = vxor.u32 2147483648, %v2102_v30  ;;  %v344_v31 = vsel %vm342_vm8, %v343_v52, %v2102_v30  ;;  %v541_v22 = vsel %vm535_vm13, %v2071_v40, %v540_v38  ;;  %v2126_v42 = vadd.s32 %v587_v46, %v583_v17 }
  0xe8   : > { %v473_v63 = vsel %vm2086_vm3, %v1811_v8, %v470_v62  ;;  %v594_v32 = vadd.s32 %v593_v58, %v584_v21  ;;  %v661_v0 = vshrl.u32 %v660_v51, 23  ;;  %v2140_v55 = vsel %vm2086_vm3, 0, %v472_v45 }
  0xe9   : > { %v341_v25 = vsel %vm339_vm2, %v2094_v60, %v340_v24  ;;  %v475_v40 = vmul.f32 %v473_v63, %v473_v63  ;;  %vm597_vm9 = vc.u32 %v2114_v36, %v2126_v42  ;;  %v595_v27 = vmul.u32 %v2027_v59, %v541_v22 }
  0xea   : > { %v345_v4 = vsel %vm338_vm4, %v341_v25, %v344_v31  ;;  %v598_v12 = vadd.s32 1, %v594_v32  ;;  %v1546_v13 = vadd.s32 4294967169, %v661_v0  ;;  %v491_v10 = vadd.s32 3, %v2140_v55 }
  0xeb   : > { %v346_v9 = vsel %vm335_vm6, nan, %v345_v4  ;;  %v476_v15 = vmul.f32 -0.001358992, %v475_v40  ;;  %v483_v14 = vmul.f32 -0.00019511016, %v475_v40  ;;  %vm490_vm15 = vweird.f32 %v1811_v8 }
  0xec   : > { %1428 = vst [vmem:[%s2147_s6] sm:$0xff] %v346_v9  ;;  %v599_v53 = vsel %vm597_vm9, %v598_v12, %v594_v32  ;;  %v657_v57 = vand.u32 2147483647, %v2041_v6  ;;  %v667_v16 = vadd.s32 1, %v1546_v13  ;;  %v492_v48 = vand.u32 3, %v491_v10 }
  0xed   : > { %v477_v5 = vadd.f32 0.041655596, %v476_v15  ;;  %v484_v23 = vadd.f32 0.008332121, %v483_v14  ;;  %v600_v26 = vadd.s32 %v599_v53, %v595_v27  ;;  %vm2234_vm5 = vcmp.le.f32.partialorder %v502_v34, 0.7853982 }
  0xee   : > { %vm668_vm10 = vcmp.gt.s32.totalorder %v667_v16, 0  ;;  %v664_v59 = vand.u32 8388607, %v657_v57  ;;  %vm493_vm11 = vcmp.lt.s32.totalorder %v492_v48, 2  ;;  %vm494_vm12 = vcmp.eq.s32.totalorder %v492_v48, 0 }
  0xef   : > { %v478_v17 = vmul.f32 %v477_v5, %v475_v40  ;;  %v485_v18 = vmul.f32 %v484_v23, %v475_v40  ;;  %v601_v39 = vadd.s32 536870912, %v600_v26  ;;  %v669_v46 = vsel %vm668_vm10, %v667_v16, 0 }
  0xf0   : > { %v671_v49 = vand.u32 31, %v669_v46  ;;  %vm497_vm13 = vcmp.eq.s32.totalorder %v492_v48, 2  ;;  %v665_v43 = vor.u32 8388608, %v664_v59  ;;  %v2161_v45 = vshrl.u32 %v669_v46, 5 }
  0xf1   : > { %v479_v56 = vadd.f32 -0.4999988, %v478_v17  ;;  %v486_v11 = vadd.f32 -0.16666654, %v485_v18  ;;  %v2154_v20 = vshrl.u32 %v601_v39, 30  ;;  %vm504_vm7 = vcmp.lt.s32.totalorder %v1828_v29, 0 }
  0xf2   : > { %v2156_v3 = vsub.s32 32, %v671_v49  ;;  %v674_v25 = vshll.u32 %v1713_v35, %v671_v49  ;;  %v677_v32 = vshll.u32 %v1714_v37, %v671_v49  ;;  %v683_v0 = vshll.u32 %v1716_v44, %v671_v49 }
  0xf3   : > { %v480_v33 = vmul.f32 %v479_v56, %v475_v40  ;;  %v487_v38 = vmul.f32 %v486_v11, %v475_v40  ;;  %v603_v19 = vshll.u32 %v2154_v20, 30  ;;  %v680_v12 = vshll.u32 %v1715_v41, %v671_v49 }
  0xf4   : > { %v675_v21 = vshrl.u32 %v1714_v37, %v2156_v3  ;;  %v678_v58 = vshrl.u32 %v1715_v41, %v2156_v3  ;;  %v681_v51 = vshrl.u32 %v1716_v44, %v2156_v3  ;;  %v684_v4 = vshrl.u32 %v1717_v47, %v2156_v3 }
  0xf5   : > { %v2159_v28 = vadd.f32 1.0, %v480_v33  ;;  %v488_v54 = vadd.f32 1.0, %v487_v38  ;;  %v604_v61 = vsub.s32 %v600_v26, %v603_v19  ;;  %vm689_vm0 = vcmp.lt.s32.totalorder %v2161_v45, 1 }
  0xf6   : > { %v2181_v15 = vor.u32 %v675_v21, %v674_v25  ;;  %v2183_v14 = vor.u32 %v678_v58, %v677_v32  ;;  %v685_v27 = vor.u32 %v684_v4, %v683_v0  ;;  %v2193_v44 = vor.u32 %v681_v51, %v680_v12 }
  0xf7   : > { %v2169_v31 = vmul.f32 %v488_v54, %v473_v63  ;;  %v498_v62 = vxor.u32 2147483648, %v2159_v28  ;;  %vm605_vm14 = vcmp.lt.s32.totalorder %v604_v61, 0  ;;  %v606_v22 = vsub.s32 0, %v604_v61 }
  0xf8   : > { %v687_v63 = vshrl.u32 %v1718_v50, %v2156_v3  ;;  %v686_v50 = vshll.u32 %v1717_v47, %v671_v49  ;;  %vm692_vm1 = vcmp.lt.s32.totalorder %v2161_v45, 4  ;;  %vm691_vm3 = vcmp.lt.s32.totalorder %v2161_v45, 3 }
  0xf9   : > { %v495_v40 = vxor.u32 2147483648, %v2169_v31  ;;  %v607_v9 = vsel %vm605_vm14, %v606_v22, %v604_v61  ;;  %v499_v41 = vsel %vm497_vm13, %v498_v62, %v2169_v31  ;;  %v697_v47 = vsel %vm689_vm0, %v2181_v15, %v2183_v14 }
  0xfa   : > { %v608_v13 = vclz %v607_v9  ;;  %v688_v5 = vor.u32 %v687_v63, %v686_v50  ;;  %v698_v23 = vsel %vm692_vm1, %v685_v27, 920167782  ;;  %v596_v26 = vadd.s32 %v2126_v42, %v2114_v36 }
  0xfb   : > { %v496_v37 = vsel %vm494_vm12, %v2159_v28, %v495_v40  ;;  %v699_v18 = vsel %vm691_vm3, %v2193_v44, %v698_v23  ;;  %v2215_v39 = vshll.u32 %v665_v43, 8  ;;  %vm690_vm4 = vcmp.lt.s32.totalorder %v2161_v45, 2 }
  0xfc   : > { %v500_v10 = vsel %vm493_vm11, %v496_v37, %v499_v41  ;;  %v1544_v53 = vadd.s32 4294967294, %v608_v13  ;;  %v701_v59 = vsel %vm689_vm0, %v2183_v14, %v2193_v44  ;;  %v700_v49 = vsel %vm690_vm4, %v697_v47, %v699_v18 }
  0xfd   : > { %v501_v16 = vsel %vm490_vm15, nan, %v500_v10  ;;  %v702_v36 = vsel %vm692_vm1, %v688_v5, 1326507024  ;;  %v706_v19 = vand.u32 65535, %v2215_v39  ;;  %v730_v54 = vand.u32 65535, %v700_v49 }
  0xfe   : > { %vm1545_vm2 = vcmp.lt.s32.totalorder %v1544_v53, 0  ;;  %1429 = vst [vmem:[%s2147_s6 + $0x8] sm:$0xff] %v501_v16  ;;  %v703_v33 = vsel %vm691_vm3, %v685_v27, %v702_v36  ;;  %v731_v43 = vshrl.u32 %v700_v49, 16  ;;  %v707_v25 = vshrl.u32 %v2215_v39, 16 }
  0xff   : > { %v611_v17 = vsel %vm1545_vm2, 0, %v1544_v53  ;;  %v704_v38 = vsel %vm690_vm4, %v701_v59, %v703_v33  ;;  %v732_v12 = vmul.u32 %v730_v54, %v706_v19  ;;  %v673_v49 = vshrl.u32 %v1713_v35, %v2156_v3 }
 0x100   : > { %v612_v46 = vsub.s32 32, %v611_v17  ;;  %v616_v48 = vsub.s32 4294967266, %v611_v17  ;;  %v613_v42 = vshll.u32 %v604_v61, %v611_v17  ;;  %v708_v51 = vand.u32 65535, %v704_v38 }
 0x101   : > { %v709_v22 = vshrl.u32 %v704_v38, 16  ;;  %v733_v32 = vmul.u32 %v731_v43, %v706_v19  ;;  %v734_v63 = vmul.u32 %v730_v54, %v707_v25  ;;  %v735_v16 = vmul.u32 %v731_v43, %v707_v25 }
 0x102   : > { %v614_v56 = vshrl.u32 %v596_v26, %v612_v46  ;;  %v617_v11 = vadd.s32 127, %v616_v48  ;;  %v712_v9 = vmul.u32 %v708_v51, %v707_v25  ;;  %v710_v41 = vmul.u32 %v708_v51, %v706_v19 }
 0x103   : > { %v711_v4 = vmul.u32 %v709_v22, %v706_v19  ;;  %v736_v13 = vshll.u32 %v733_v32, 16  ;;  %v713_v10 = vmul.u32 %v709_v22, %v707_v25  ;;  %v738_v26 = vshll.u32 %v734_v63, 16 }
 0x104   : > { %v615_v21 = vor.u32 %v614_v56, %v613_v42  ;;  %v618_v58 = vshll.u32 %v617_v11, 23  ;;  %v716_v53 = vshll.u32 %v712_v9, 16  ;;  %v626_v48 = vsub.s32 4, %v2154_v20 }
 0x105   : > { %v714_v50 = vshll.u32 %v711_v4, 16  ;;  %vm740_vm8 = vc.u32 %v732_v12, %v736_v13  ;;  %v742_v17 = vadd.s32 %v736_v13, %v732_v12  ;;  %v694_v36 = vsel %vm692_vm1, %v2193_v44, 2102212464 }
 0x106   : > { %v619_v0 = vor.u32 4788187, %v618_v58  ;;  %v622_v37 = vcvt.s32.f32 %v615_v21  ;;  %v741_v47 = vsel %vm740_vm8, 1, %v1712_v1  ;;  %v715_v11 = vshrl.u32 %v711_v4, 16 }
 0x107   : > { %vm718_vm9 = vc.u32 %v710_v41, %v714_v50  ;;  %v720_v5 = vadd.s32 %v714_v50, %v710_v41  ;;  %v743_v18 = vadd.s32 %v741_v47, %v735_v16  ;;  %vm744_vm11 = vc.u32 %v742_v17, %v738_v26 }
 0x108   : > { %v620_v27 = vand.u32 2147483647, %v619_v0  ;;  %v719_v23 = vsel %vm718_vm9, 1, %v1712_v1  ;;  %v745_v38 = vsel %vm744_vm11, 1, %v1712_v1  ;;  %v693_v35 = vsel %vm689_vm0, %v673_v49, %v2181_v15 }
 0x109   : > { %v721_v59 = vadd.s32 %v719_v23, %v713_v10  ;;  %vm722_vm10 = vc.u32 %v720_v5, %v716_v53  ;;  %v737_v3 = vshrl.u32 %v733_v32, 16  ;;  %v747_v44 = vadd.s32 %v745_v38, %v743_v18 }
 0x10a   : > { %v623_v34 = vmul.f32 %v622_v37, %v620_v27  ;;  %v723_v42 = vsel %vm722_vm10, 1, %v1712_v1  ;;  %v695_v43 = vsel %vm691_vm3, %v2183_v14, %v694_v36  ;;  %v717_v21 = vshrl.u32 %v712_v9, 16 }
 0x10b   : > { %v725_v33 = vadd.s32 %v723_v42, %v721_v59  ;;  %v739_v51 = vshrl.u32 %v734_v63, 16  ;;  %v748_v22 = vadd.s32 %v747_v44, %v737_v3  ;;  %v2262_v4 = vadd.s32 %v742_v17, %v738_v26 }
 0x10c   : > { %v624_v46 = vxor.u32 2147483648, %v623_v34  ;;  %v627_v15 = vsel %vm504_vm7, %v626_v48, %v2154_v20  ;;  %v696_v32 = vsel %vm690_vm4, %v693_v35, %v695_v43  ;;  %v956_v48 = vand.u32 3, %v1989_v2 }
 0x10d   : > { %v726_v58 = vadd.s32 %v725_v33, %v715_v11  ;;  %v749_v12 = vadd.s32 %v748_v22, %v739_v51  ;;  %v629_v63 = vsel %vm2234_vm5, 0, %v627_v15  ;;  %v750_v41 = vmul.u32 %v2215_v39, %v696_v32 }
 0x10e   : > { %v625_v56 = vsel %vm504_vm7, %v624_v46, %v623_v34  ;;  %v646_v45 = vadd.s32 3, %v629_v63  ;;  %v1110_v49 = vand.u32 3, %v2140_v55  ;;  %vm645_vm2 = vweird.f32 %v1828_v29 }
 0x10f   : > { %v628_v19 = vsel %vm2234_vm5, %v1828_v29, %v625_v56  ;;  %v2260_v0 = vadd.s32 %v726_v58, %v717_v21  ;;  %v753_v9 = vadd.s32 1, %v749_v12  ;;  %vm961_vm3 = vcmp.eq.s32.totalorder %v956_v48, 2 }
 0x110   : > { %v630_v54 = vmul.f32 %v628_v19, %v628_v19  ;;  %v647_v17 = vand.u32 3, %v646_v45  ;;  %v963_v38 = vsel %vm961_vm3, %v343_v52, %v2102_v30  ;;  %vm957_vm4 = vcmp.lt.s32.totalorder %v956_v48, 2 }
 0x111   : > { %vm752_vm12 = vc.u32 %v2260_v0, %v2262_v4  ;;  %vm958_vm5 = vcmp.eq.s32.totalorder %v956_v48, 0  ;;  %vm1111_vm7 = vcmp.lt.s32.totalorder %v1110_v49, 2  ;;  %vm1112_vm8 = vcmp.eq.s32.totalorder %v1110_v49, 0 }
 0x112   : > { %v631_v1 = vmul.f32 -0.001358992, %v630_v54  ;;  %v638_v25 = vmul.f32 -0.00019511016, %v630_v54  ;;  %v754_v50 = vsel %vm752_vm12, %v753_v9, %v749_v12  ;;  %vm648_vm13 = vcmp.lt.s32.totalorder %v647_v17, 2 }
 0x113   : > { %v755_v53 = vadd.s32 %v754_v50, %v750_v41  ;;  %vm649_vm14 = vcmp.eq.s32.totalorder %v647_v17, 0  ;;  %vm652_vm0 = vcmp.eq.s32.totalorder %v647_v17, 2  ;;  %v960_v55 = vsel %vm958_vm5, %v2094_v60, %v340_v24 }
 0x114   : > { %v632_v13 = vadd.f32 0.041655596, %v631_v1  ;;  %v639_v14 = vadd.f32 0.008332121, %v638_v25  ;;  %vm1115_vm9 = vcmp.eq.s32.totalorder %v1110_v49, 2  ;;  %v964_v3 = vsel %vm957_vm4, %v960_v55, %v963_v38 }
 0x115   : > { %v756_v5 = vadd.s32 536870912, %v755_v53  ;;  %v1114_v44 = vsel %vm1112_vm8, %v2159_v28, %v495_v40  ;;  %v1117_v52 = vsel %vm1115_vm9, %v498_v62, %v2169_v31  ;;  %v1264_v43 = vand.u32 3, %v629_v63 }
 0x116   : > { %v633_v27 = vmul.f32 %v632_v13, %v630_v54  ;;  %v640_v37 = vmul.f32 %v639_v14, %v630_v54  ;;  %v1118_v30 = vsel %vm1111_vm7, %v1114_v44, %v1117_v52  ;;  %v751_v21 = vadd.s32 %v2262_v4, %v2260_v0 }
 0x117   : > { %v2274_v26 = vshrl.u32 %v756_v5, 30  ;;  %v1119_v60 = vsel %vm490_vm15, nan, %v1118_v30  ;;  %vm1266_vm11 = vcmp.eq.s32.totalorder %v1264_v43, 0  ;;  %vm1265_vm12 = vcmp.lt.s32.totalorder %v1264_v43, 2 }
 0x118   : > { %v634_v10 = vadd.f32 -0.4999988, %v633_v27  ;;  %v641_v20 = vadd.f32 -0.16666654, %v640_v37  ;;  %1433 = vst [vmem:[%s2147_s6 + $0x28] sm:$0xff] %v1119_v60  ;;  %vm659_vm15 = vcmp.lt.s32.totalorder %v2041_v6, 0  ;;  %vm800_vm5 = vweird.f32 %v2041_v6 }
 0x119   : > { %v758_v46 = vshll.u32 %v2274_v26, 30  ;;  %v781_v14 = vsub.s32 4, %v2274_v26 }
 0x11a   : > { %v635_v16 = vmul.f32 %v634_v10, %v630_v54  ;;  %v642_v34 = vmul.f32 %v641_v20, %v630_v54  ;;  %v965_v54 = vsel %vm335_vm6, nan, %v964_v3  ;;  %vm1269_vm6 = vcmp.eq.s32.totalorder %v1264_v43, 2 }
 0x11b   : > { %v759_v59 = vsub.s32 %v755_v53, %v758_v46  ;;  %1432 = vst [vmem:[%s2147_s6 + $0x20] sm:$0xff] %v965_v54  ;;  %v782_v37 = vsel %vm659_vm15, %v781_v14, %v2274_v26 }
 0x11c   : > { %v636_v47 = vadd.f32 1.0, %v635_v16  ;;  %v643_v23 = vadd.f32 1.0, %v642_v34 }
 0x11d   : > { %vm760_vm1 = vcmp.lt.s32.totalorder %v759_v59, 0  ;;  %v761_v56 = vsub.s32 0, %v759_v59 }
 0x11e   : > { %v644_v18 = vmul.f32 %v643_v23, %v628_v19  ;;  %v653_v61 = vxor.u32 2147483648, %v636_v47 }
 0x11f   : > { %v762_v2 = vsel %vm760_vm1, %v761_v56, %v759_v59 }
 0x120   : > { %v650_v39 = vxor.u32 2147483648, %v644_v18  ;;  %v654_v42 = vsel %vm652_vm0, %v653_v61, %v644_v18  ;;  %v763_v19 = vclz %v762_v2  ;;  %v1271_v51 = vsel %vm1269_vm6, %v653_v61, %v644_v18 }
 0x122   : > { %v651_v36 = vsel %vm649_vm14, %v636_v47, %v650_v39  ;;  %v1547_v35 = vadd.s32 4294967294, %v763_v19  ;;  %v1268_v62 = vsel %vm1266_vm11, %v636_v47, %v650_v39 }
 0x123   : > { %v655_v11 = vsel %vm648_vm13, %v651_v36, %v654_v42  ;;  %v1272_v1 = vsel %vm1265_vm12, %v1268_v62, %v1271_v51  ;;  %vm658_vm13 = vcmp.le.f32.partialorder %v657_v57, 0.7853982 }
 0x124   : > { %v656_v33 = vsel %vm645_vm2, nan, %v655_v11  ;;  %vm1548_vm10 = vcmp.lt.s32.totalorder %v1547_v35, 0  ;;  %v1273_v25 = vsel %vm645_vm2, nan, %v1272_v1  ;;  %v784_v10 = vsel %vm658_vm13, 0, %v782_v37 }
 0x125   : > { %1430 = vst [vmem:[%s2147_s6 + $0x10] sm:$0xff] %v656_v33  ;;  %v766_v24 = vsel %vm1548_vm10, 0, %v1547_v35  ;;  %v801_v57 = vadd.s32 3, %v784_v10  ;;  %v1418_v17 = vand.u32 3, %v784_v10 }
 0x126   : > { %v767_v40 = vsub.s32 32, %v766_v24  ;;  %v771_v58 = vsub.s32 4294967266, %v766_v24  ;;  %v768_v28 = vshll.u32 %v759_v59, %v766_v24  ;;  %1434 = vst [vmem:[%s2147_s6 + $0x30] sm:$0xff] %v1273_v25 }
 0x127   : > { %v802_v18 = vand.u32 3, %v801_v57  ;;  %vm1419_vm14 = vcmp.lt.s32.totalorder %v1418_v17, 2  ;;  %vm1420_vm0 = vcmp.eq.s32.totalorder %v1418_v17, 0  ;;  %vm1423_vm4 = vcmp.eq.s32.totalorder %v1418_v17, 2 }
 0x128   : > { %v769_v31 = vshrl.u32 %v751_v21, %v767_v40  ;;  %v772_v7 = vadd.s32 127, %v771_v58 }
 0x129   : > { %vm803_vm1 = vcmp.lt.s32.totalorder %v802_v18, 2  ;;  %vm804_vm2 = vcmp.eq.s32.totalorder %v802_v18, 0  ;;  %vm807_vm3 = vcmp.eq.s32.totalorder %v802_v18, 2 }
 0x12a   : > { %v770_v22 = vor.u32 %v769_v31, %v768_v28  ;;  %v773_v8 = vshll.u32 %v772_v7, 23 }
 0x12c   : > { %v774_v15 = vor.u32 4788187, %v773_v8  ;;  %v777_v4 = vcvt.s32.f32 %v770_v22 }
 0x12e   : > { %v775_v0 = vand.u32 2147483647, %v774_v15 }
 0x130   : > { %v778_v32 = vmul.f32 %v777_v4, %v775_v0 }
 0x132   : > { %v779_v12 = vxor.u32 2147483648, %v778_v32 }
 0x134   : > { %v780_v13 = vsel %vm659_vm15, %v779_v12, %v778_v32 }
 0x135   : > { %v783_v9 = vsel %vm658_vm13, %v2041_v6, %v780_v13 }
 0x136   : > { %v785_v63 = vmul.f32 %v783_v9, %v783_v9 }
 0x138   : > { %v786_v29 = vmul.f32 -0.001358992, %v785_v63  ;;  %v793_v27 = vmul.f32 -0.00019511016, %v785_v63 }
 0x13a   : > { %v787_v41 = vadd.f32 0.041655596, %v786_v29  ;;  %v794_v50 = vadd.f32 0.008332121, %v793_v27 }
 0x13c   : > { %v788_v20 = vmul.f32 %v787_v41, %v785_v63  ;;  %v795_v53 = vmul.f32 %v794_v50, %v785_v63 }
 0x13e   : > { %v789_v45 = vadd.f32 -0.4999988, %v788_v20  ;;  %v796_v16 = vadd.f32 -0.16666654, %v795_v53 }
 0x140   : > { %v790_v34 = vmul.f32 %v789_v45, %v785_v63  ;;  %v797_v5 = vmul.f32 %v796_v16, %v785_v63 }
 0x142   : > { %v791_v47 = vadd.f32 1.0, %v790_v34  ;;  %v798_v23 = vadd.f32 1.0, %v797_v5 }
 0x144   : > { %v799_v26 = vmul.f32 %v798_v23, %v783_v9  ;;  %v808_v61 = vxor.u32 2147483648, %v791_v47 }
 0x146   : > { %v805_v46 = vxor.u32 2147483648, %v799_v26  ;;  %v809_v39 = vsel %vm807_vm3, %v808_v61, %v799_v26  ;;  %v1425_v49 = vsel %vm1423_vm4, %v808_v61, %v799_v26 }
 0x148   : > { %v806_v48 = vsel %vm804_vm2, %v791_v47, %v805_v46  ;;  %v1422_v59 = vsel %vm1420_vm0, %v791_v47, %v805_v46 }
 0x149   : > { %v810_v36 = vsel %vm803_vm1, %v806_v48, %v809_v39  ;;  %v1426_v42 = vsel %vm1419_vm14, %v1422_v59, %v1425_v49 }
 0x14a   : > { %v811_v56 = vsel %vm800_vm5, nan, %v810_v36  ;;  %v1427_v11 = vsel %vm800_vm5, nan, %v1426_v42 }
 0x14b   : > { %1431 = vst [vmem:[%s2147_s6 + $0x18] sm:$0xff] %v811_v56 }
 0x14c   : > { %1435 = vst [vmem:[%s2147_s6 + $0x38] sm:$0xff] %v1427_v11 }
 0x14d   : > { %1659 = shalt.err (!%p1656_p5)
}
 0x14e   : > { %s1719_s30 = smov 256   ;;  %s1720_s3 = smov 16  }
 0x14f   : > { %1567 = dma.vmem_to_hbm [thread:$0]  (%p1776_p4), %s1452_s18, 1024, %s1454_s20, %s1437_s12, %s1719_s30, %s1719_s30, %s1720_s3  }
 0x150 PF: > { %p1573_p6 = scmp.ge.s32.totalorder %s1710_s14, 2  ;;  %s1468_s4 = sand.u32 1, %s1690_s9  }
 0x151   : > { %s1469_s5 = scalar_lea.sflag [#allocation3], %s1468_s4 }
 0x152   : > { %p1570_p7 = pnand %p1573_p6, %p1783_p8 }
 0x154   : > { %p1571_p9 = pneg %p1570_p7 }
 0x156   : > { %1685 = dma.done.wait (%p1571_p9), %s1469_s5, 1024  }
 0x157   : > { %1687 = vsyncadd (%p1571_p9), %s1469_s5, 4294966272  ;;  %s15_s14 = sadd.s32 1, %s1710_s14   ;;  %s2365_s9 = smov %s1694_s10 }
 0x158   : > { %p12_p10 = scmp.ge.s32.totalorder %s15_s14, 4   ;;  %s2366_s10 = smov %s1698_s11 }
 0x159   : > { %s2367_s11 = smov %s1789_s22  ;;  %s2368_s12 = smov %s1706_s13 }
 0x15a   : > { %s2369_s13 = smov %s2371_s17  ;;  %14 = sbr.rel (!%p12_p10) target bundleno = 4 (0x4), region = 63 }
 0x15f   :  { %1475 = vsyncpa [#allocation3], 1 }
 0x160   :  { %1477 = vsyncpa [#allocation3 + $0x1], 1 }

</bundles_post_ra>
